<compile_context>
chip_gen: v6e
topology: v6e:2x2x1
jax: 0.10.0
libtpu: 0.0.40
codegen_flags: <defaults>
</compile_context>

<pallas_src>
import functools

import jax
import jax.numpy as jnp
import numpy as np
from jax import lax
from jax.experimental import pallas as pl
from jax.experimental.pallas import tpu as pltpu


def _channel_attention_kernel(x_ref, w1t_ref, w2t_ref, o_ref, sum_ref, max_ref,
                              *, hw_total, tile_hw, needs_mask):
    # x_ref:  [TB, C, THW]   w1t_ref: [C, mid]   w2t_ref: [mid, C]
    # o_ref:  [TB, C]        sum_ref / max_ref: [TB, C] f32 scratch accumulators
    k = pl.program_id(1)

    @pl.when(k == 0)
    def _init():
        sum_ref[...] = jnp.zeros_like(sum_ref)
        max_ref[...] = jnp.full(max_ref.shape, -jnp.inf, dtype=max_ref.dtype)

    # Single load of the spatial tile; cast in VMEM (input stays native dtype in HBM).
    x = x_ref[...].astype(jnp.float32)                        # [TB, C, THW]

    if needs_mask:
        # Only emitted when HW % THW != 0: mask the padded tail of the last tile.
        idx = lax.broadcasted_iota(jnp.int32, x.shape, dimension=2)
        valid = idx < (hw_total - k * tile_hw)
        x_sum_in = jnp.where(valid, x, 0.0)
        x_max_in = jnp.where(valid, x, -jnp.inf)
    else:
        x_sum_in = x
        x_max_in = x

    # One pass over the tile updates both running reductions.
    sum_ref[...] += jnp.sum(x_sum_in, axis=-1)                # [TB, C]
    max_ref[...] = jnp.maximum(max_ref[...], jnp.max(x_max_in, axis=-1))

    @pl.when(k == pl.num_programs(1) - 1)
    def _finalize():
        w1t = w1t_ref[...].astype(jnp.float32)                # [C, mid]
        w2t = w2t_ref[...].astype(jnp.float32)                # [mid, C]

        avg = sum_ref[...] * (1.0 / float(hw_total))          # true-HW mean, [TB, C]
        mx = max_ref[...]                                     # [TB, C]

        # Shared MLP; second (linear) layer fused into a single matmul.
        h = (jnp.maximum(jnp.dot(avg, w1t, preferred_element_type=jnp.float32), 0.0)
             + jnp.maximum(jnp.dot(mx, w1t, preferred_element_type=jnp.float32), 0.0))
        out = jnp.dot(h, w2t, preferred_element_type=jnp.float32)   # [TB, C]

        o_ref[...] = jax.nn.sigmoid(out).astype(o_ref.dtype)


def channel_attention(x, w1, w2, *, max_hw_tile=None,
                      hw_vmem_budget_bytes=8 * 1024 * 1024):
    """x: [B, C, H, W] (NCHW, any float dtype).
    w1: [C//r, C], w2: [C, C//r]  (bias-free 1x1 conv weights).
    Returns sigmoid channel-attention map of shape [B, C, 1, 1] (dtype of x)."""
    B, C, H, W = x.shape
    mid = w1.shape[0]
    hw = H * W

    x_flat = x.reshape(B, C, hw)                 # no dtype up-cast in the wrapper
    w1t = jnp.transpose(w1)                      # [C, mid]  (tiny)
    w2t = jnp.transpose(w2)                      # [mid, C]

    # Batch tile: up to 8 rows per grid step (8 divides sublane tiling; TB==B if B<=8).
    tb = min(B, 8)

    # Spatial tile: biggest tile that keeps the double-buffered x window in budget,
    # rounded to a lane multiple (128) unless it covers the full spatial extent.
    itemsize = jnp.dtype(x.dtype).itemsize
    if max_hw_tile is not None:
        cap = int(max_hw_tile)
    else:
        cap = max(128, hw_vmem_budget_bytes // (2 * tb * C * itemsize))
    if hw <= cap:
        thw = hw
    else:
        thw = max(128, (cap // 128) * 128)
    n_hw = pl.cdiv(hw, thw)
    needs_mask = (hw % thw) != 0

    kernel = functools.partial(
        _channel_attention_kernel,
        hw_total=hw, tile_hw=thw, needs_mask=needs_mask)

    out = pl.pallas_call(
        kernel,
        out_shape=jax.ShapeDtypeStruct((B, C), x.dtype),
        grid_spec=pltpu.PrefetchScalarGridSpec(
            num_scalar_prefetch=0,
            grid=(pl.cdiv(B, tb), n_hw),
            in_specs=[
                pl.BlockSpec((tb, C, thw), lambda b, k: (b, 0, k)),
                pl.BlockSpec((C, mid), lambda b, k: (0, 0)),
                pl.BlockSpec((mid, C), lambda b, k: (0, 0)),
            ],
            out_specs=pl.BlockSpec((tb, C), lambda b, k: (b, 0)),
            scratch_shapes=[
                pltpu.VMEM((tb, C), jnp.float32),   # running sum
                pltpu.VMEM((tb, C), jnp.float32),   # running max
            ],
        ),
        compiler_params=pltpu.CompilerParams(
            dimension_semantics=("parallel", "arbitrary"),
            vmem_limit_bytes=32 * 1024 * 1024,
        ),
    )(x_flat, w1t, w2t)

    return out.reshape(B, C, 1, 1)


def _reference(x, w1, w2):
    # Pure-JAX reference mirroring the PyTorch forward.
    B, C, H, W = x.shape
    xf = x.astype(jnp.float32)
    avg = jnp.mean(xf, axis=(2, 3))          # [B, C]
    mx = jnp.max(xf, axis=(2, 3))            # [B, C]

    def fc(v):
        h = jnp.maximum(v @ w1.astype(jnp.float32).T, 0.0)
        return h @ w2.astype(jnp.float32).T

    out = jax.nn.sigmoid(fc(avg) + fc(mx))
    return out.reshape(B, C, 1, 1).astype(x.dtype)


if __name__ == "__main__":
    key = jax.random.PRNGKey(0)
    kx, k1, k2 = jax.random.split(key, 3)

    # --- Test 1: small CBAM-like shapes; single reduction step (THW == H*W). ---
    B, C, H, W = 2, 32, 16, 16
    reduction_ratio = 16
    mid = C // reduction_ratio               # 2

    x = jax.random.normal(kx, (B, C, H, W), dtype=jnp.float32)
    w1 = jax.random.normal(k1, (mid, C), dtype=jnp.float32) * (1.0 / np.sqrt(C))
    w2 = jax.random.normal(k2, (C, mid), dtype=jnp.float32) * (1.0 / np.sqrt(mid))

    out = jax.block_until_ready(channel_attention(x, w1, w2))
    ref = _reference(x, w1, w2)
    np.testing.assert_allclose(np.asarray(out), np.asarray(ref), rtol=1e-5, atol=1e-5)
    assert out.shape == (B, C, 1, 1)

    # --- Test 2: force the tiled-HW reduction path (multi-step accumulator + masked tail). ---
    B2, C2, H2, W2 = 3, 32, 7, 27            # HW = 189 -> two 128-wide tiles, masked tail
    mid2 = C2 // reduction_ratio
    x2 = jax.random.normal(jax.random.PRNGKey(1), (B2, C2, H2, W2), dtype=jnp.float32)
    w1b = jax.random.normal(jax.random.PRNGKey(2), (mid2, C2), dtype=jnp.float32) * (1.0 / np.sqrt(C2))
    w2b = jax.random.normal(jax.random.PRNGKey(3), (C2, mid2), dtype=jnp.float32) * (1.0 / np.sqrt(mid2))

    out2 = jax.block_until_ready(channel_attention(x2, w1b, w2b, max_hw_tile=128))
    ref2 = _reference(x2, w1b, w2b)
    np.testing.assert_allclose(np.asarray(out2), np.asarray(ref2), rtol=1e-5, atol=1e-5)

    print("KERNEL_OK")
</pallas_src>

<mosaic_0001>
module attributes {stable_mosaic.version = 11 : i64} {
  func.func @_channel_attention_kernel(%arg0: i32, %arg1: i32, %arg2: memref<2x32x256xf32, #tpu.memory_space<vmem>>, %arg3: memref<32x2xf32, #tpu.memory_space<vmem>>, %arg4: memref<2x32xf32, #tpu.memory_space<vmem>>, %arg5: memref<2x32xf32, #tpu.memory_space<vmem>>, %arg6: memref<2x32xf32, #tpu.memory_space<vmem>>, %arg7: memref<2x32xf32, #tpu.memory_space<vmem>>) attributes {dimension_semantics = [#tpu.dimension_semantics<parallel>, #tpu.dimension_semantics<arbitrary>], iteration_bounds = array<i64: 1, 1>, scalar_prefetch = 0 : i64, scratch_operands = 2 : i64, tpu.core_type = #tpu.core_type<tc>, window_params = [{transform_indices = @transform_0, window_bounds = array<i64: 2, 32, 256>}, {pipeline_mode = #tpu.pipeline_mode<synchronous>, transform_indices = @transform_1, window_bounds = array<i64: 32, 2>}, {pipeline_mode = #tpu.pipeline_mode<synchronous>, transform_indices = @transform_2, window_bounds = array<i64: 2, 32>}, {transform_indices = @transform_3, window_bounds = array<i64: 2, 32>}]} {
    %c0_i32 = arith.constant 0 : i32
    %0 = arith.cmpi eq, %arg1, %c0_i32 : i32
    %1 = arith.extui %0 : i1 to i32
    %c0_i32_0 = arith.constant 0 : i32
    %2 = arith.cmpi ne, %1, %c0_i32_0 : i32
    scf.if %2 {
      %cst_14 = arith.constant 0.000000e+00 : f32
      %15 = vector.broadcast %cst_14 : f32 to vector<2x32xf32>
      %c0_15 = arith.constant 0 : index
      %c0_16 = arith.constant 0 : index
      %16 = vector.load %arg6[%c0_15, %c0_16] : memref<2x32xf32, #tpu.memory_space<vmem>>, vector<2x32xf32>
      tpu.vector_store %arg6[%c0_15, %c0_16], %15 {strides = array<i32>} : memref<2x32xf32, #tpu.memory_space<vmem>>, vector<2x32xf32>,
      %cst_17 = arith.constant 0xFF800000 : f32
      %17 = vector.broadcast %cst_17 : f32 to vector<2x32xf32>
      %c0_18 = arith.constant 0 : index
      %c0_19 = arith.constant 0 : index
      %18 = vector.load %arg7[%c0_18, %c0_19] : memref<2x32xf32, #tpu.memory_space<vmem>>, vector<2x32xf32>
      tpu.vector_store %arg7[%c0_18, %c0_19], %17 {strides = array<i32>} : memref<2x32xf32, #tpu.memory_space<vmem>>, vector<2x32xf32>,
    } else {
    }
    %c0 = arith.constant 0 : index
    %c0_1 = arith.constant 0 : index
    %c0_2 = arith.constant 0 : index
    %3 = vector.load %arg2[%c0, %c0_1, %c0_2] : memref<2x32x256xf32, #tpu.memory_space<vmem>>, vector<2x32x256xf32>
    %c0_3 = arith.constant 0 : index
    %c0_4 = arith.constant 0 : index
    %4 = vector.load %arg6[%c0_3, %c0_4] : memref<2x32xf32, #tpu.memory_space<vmem>>, vector<2x32xf32>
    %cst = arith.constant dense<0.000000e+00> : vector<2x32xf32>
    %5 = vector.multi_reduction <add>, %3, %cst [2] : vector<2x32x256xf32> to vector<2x32xf32>
    %6 = arith.addf %4, %5 : vector<2x32xf32>
    %c0_5 = arith.constant 0 : index
    %c0_6 = arith.constant 0 : index
    %7 = vector.load %arg6[%c0_5, %c0_6] : memref<2x32xf32, #tpu.memory_space<vmem>>, vector<2x32xf32>
    tpu.vector_store %arg6[%c0_5, %c0_6], %6 {strides = array<i32>} : memref<2x32xf32, #tpu.memory_space<vmem>>, vector<2x32xf32>,
    %c0_7 = arith.constant 0 : index
    %c0_8 = arith.constant 0 : index
    %8 = vector.load %arg7[%c0_7, %c0_8] : memref<2x32xf32, #tpu.memory_space<vmem>>, vector<2x32xf32>
    %cst_9 = arith.constant dense<0xFF800000> : vector<2x32xf32>
    %9 = vector.multi_reduction <maximumf>, %3, %cst_9 [2] : vector<2x32x256xf32> to vector<2x32xf32>
    %10 = arith.maximumf %8, %9 : vector<2x32xf32>
    %c0_10 = arith.constant 0 : index
    %c0_11 = arith.constant 0 : index
    %11 = vector.load %arg7[%c0_10, %c0_11] : memref<2x32xf32, #tpu.memory_space<vmem>>, vector<2x32xf32>
    tpu.vector_store %arg7[%c0_10, %c0_11], %10 {strides = array<i32>} : memref<2x32xf32, #tpu.memory_space<vmem>>, vector<2x32xf32>,
    %c0_i32_12 = arith.constant 0 : i32
    %12 = arith.cmpi eq, %arg1, %c0_i32_12 : i32
    %13 = arith.extui %12 : i1 to i32
    %c0_i32_13 = arith.constant 0 : i32
    %14 = arith.cmpi ne, %13, %c0_i32_13 : i32
    scf.if %14 {
      %c0_14 = arith.constant 0 : index
      %c0_15 = arith.constant 0 : index
      %15 = vector.load %arg3[%c0_14, %c0_15] : memref<32x2xf32, #tpu.memory_space<vmem>>, vector<32x2xf32>
      %c0_16 = arith.constant 0 : index
      %c0_17 = arith.constant 0 : index
      %16 = vector.load %arg4[%c0_16, %c0_17] : memref<2x32xf32, #tpu.memory_space<vmem>>, vector<2x32xf32>
      %c0_18 = arith.constant 0 : index
      %c0_19 = arith.constant 0 : index
      %17 = vector.load %arg6[%c0_18, %c0_19] : memref<2x32xf32, #tpu.memory_space<vmem>>, vector<2x32xf32>
      %cst_20 = arith.constant 3.906250e-03 : f32
      %18 = vector.broadcast %cst_20 : f32 to vector<2x32xf32>
      %19 = arith.mulf %17, %18 : vector<2x32xf32>
      %c0_21 = arith.constant 0 : index
      %c0_22 = arith.constant 0 : index
      %20 = vector.load %arg7[%c0_21, %c0_22] : memref<2x32xf32, #tpu.memory_space<vmem>>, vector<2x32xf32>
      %cst_23 = arith.constant dense<0.000000e+00> : vector<2x2xf32>
      %21 = tpu.matmul %19, %15, %cst_23 {dimension_numbers = #tpu.dot_dimension_numbers<[1], [0], [0], [1], [0, 0, 1, 1], [], []>} : vector<2x32xf32>, vector<32x2xf32>, vector<2x2xf32> -> vector<2x2xf32>
      %cst_24 = arith.constant 0.000000e+00 : f32
      %22 = vector.broadcast %cst_24 : f32 to vector<2x2xf32>
      %23 = arith.maximumf %21, %22 : vector<2x2xf32>
      %cst_25 = arith.constant dense<0.000000e+00> : vector<2x2xf32>
      %24 = tpu.matmul %20, %15, %cst_25 {dimension_numbers = #tpu.dot_dimension_numbers<[1], [0], [0], [1], [0, 0, 1, 1], [], []>} : vector<2x32xf32>, vector<32x2xf32>, vector<2x2xf32> -> vector<2x2xf32>
      %cst_26 = arith.constant 0.000000e+00 : f32
      %25 = vector.broadcast %cst_26 : f32 to vector<2x2xf32>
      %26 = arith.maximumf %24, %25 : vector<2x2xf32>
      %27 = arith.addf %23, %26 : vector<2x2xf32>
      %cst_27 = arith.constant dense<0.000000e+00> : vector<2x32xf32>
      %28 = tpu.matmul %27, %16, %cst_27 {dimension_numbers = #tpu.dot_dimension_numbers<[1], [0], [0], [1], [0, 0, 1, 1], [], []>} : vector<2x2xf32>, vector<2x32xf32>, vector<2x32xf32> -> vector<2x32xf32>
      %29 = arith.negf %28 : vector<2x32xf32>
      %30 = math.exp %29 : vector<2x32xf32>
      %cst_28 = arith.constant 1.000000e+00 : f32
      %31 = vector.broadcast %cst_28 : f32 to vector<2x32xf32>
      %32 = arith.addf %31, %30 : vector<2x32xf32>
      %33 = arith.divf %31, %32 : vector<2x32xf32>
      %c0_29 = arith.constant 0 : index
      %c0_30 = arith.constant 0 : index
      %34 = vector.load %arg5[%c0_29, %c0_30] : memref<2x32xf32, #tpu.memory_space<vmem>>, vector<2x32xf32>
      tpu.vector_store %arg5[%c0_29, %c0_30], %33 {strides = array<i32>} : memref<2x32xf32, #tpu.memory_space<vmem>>, vector<2x32xf32>,
    } else {
    }
    return
  }
  func.func @transform_0(%arg0: i32, %arg1: i32) -> (i32, i32, i32) {
    %c0_i32 = arith.constant 0 : i32
    %c0_i32_0 = arith.constant 0 : i32
    return %arg0, %c0_i32, %arg1 : i32, i32, i32
  }
  func.func @transform_1(%arg0: i32, %arg1: i32) -> (i32, i32) {
    %c0_i32 = arith.constant 0 : i32
    %c0_i32_0 = arith.constant 0 : i32
    %c0_i32_1 = arith.constant 0 : i32
    return %c0_i32, %c0_i32_0 : i32, i32
  }
  func.func @transform_2(%arg0: i32, %arg1: i32) -> (i32, i32) {
    %c0_i32 = arith.constant 0 : i32
    %c0_i32_0 = arith.constant 0 : i32
    %c0_i32_1 = arith.constant 0 : i32
    return %c0_i32, %c0_i32_0 : i32, i32
  }
  func.func @transform_3(%arg0: i32, %arg1: i32) -> (i32, i32) {
    %c0_i32 = arith.constant 0 : i32
    %c0_i32_0 = arith.constant 0 : i32
    return %arg0, %c0_i32 : i32, i32
  }
}

</mosaic_0001>

<bundles_post_ra>
// kernel: tpu_custom_call.1
= control target key start
LH: loop header
LB: loop body
LE: loop exit
PB: predicated region body
PF: predicated region fallthrough
CT: control target
= control target key end

     0   :  { %8 = vsyncpa [#allocation5], 0  ;;  %s657_s0 = inlined_call_operand.hbm [shape: f32[2,32,256], index: 0, kind: input, shape index: {}]   ;;  %s658_s1 = inlined_call_operand.vmem [shape: f32[32,2], index: 1, kind: input, shape index: {}]   ;;  %s659_s2 = inlined_call_operand.vmem [shape: f32[2,32], index: 2, kind: input, shape index: {}]   ;;  %s660_s3 = inlined_call_operand.hbm [shape: f32[2,32], index: 3, kind: output, shape index: {}]  }
   0x1   :  { %9 = vsyncpa [#allocation6], 0  ;;  %s572_s12 = smov [#allocation4]  }
   0x2   :  { %s15_s13 = sshll.u32 %s572_s12, 4  ;;  %s16_s13 = int_to_ptr.vmem [resolvable:$true] %s15_s13 }
   0x3   :  { %s536_s14 = scalar_lea.vmem %s16_s13, 2048  ;;  %p541_p1 = scmp.lt.s32.totalorder %s16_s13, %s16_s13 }
   0x4   :  { %p537_p0 = scmp.ne.s32.totalorder %s16_s13, %s536_s14  ;;  %p542_p2 = scmp.lt.s32.totalorder %s536_s14, %s536_s14 }
   0x6   :  { %p543_p3 = por %p542_p2, %p541_p1 }
   0x8   :  { %p544_p4 = pnand %p543_p3, %p537_p0 }
   0xa   :  { %547 = shalt.err (!%p544_p4)
}
   0xb   :  { %s573_s15 = smov 256   ;;  %s574_s16 = smov 16  }
   0xc   :  { %21 = dma.hbm_to_vmem [thread:$0]  %s657_s0, 2048, %s16_s13, [#allocation5], %s573_s15, %s573_s15, %s574_s16  }
   0xd   :  { %568 = dma.done.wait [#allocation5], 2048  }
   0xe   :  { %569 = vsyncadd [#allocation5], 4294965248  ;;  %v44_v0 = vld [vmem:[#allocation4 + $0x40] sm:$0xff]  ;;  %v45_v1 = vld [vmem:[#allocation4 + $0x48] sm:$0xff]  ;;  %vm33_vm0 = vcmask 254976   ;;  %v575_v28 = vmov 0.0   ;;  %v85_v38 = vlaneseq }
   0xf   :  { %v36_v2 = vld [vmem:[#allocation4] sm:$0xff]  ;;  %v65_v3 = vadd.f32 %v45_v1, %v44_v0  ;;  %v37_v4 = vld [vmem:[#allocation4 + $0x8] sm:$0xff]  ;;  %v46_v5 = vld [vmem:[#allocation4 + $0x50] sm:$0xff]  ;;  %v150_v27 = vmax.f32 %v44_v0, %v45_v1  ;;  %34 = vst.msk [vmem:[#allocation2] sm:$0x3] %vm33_vm0, %v575_v28  ;;  %490 = vmatprep.subr.mxu0 %v575_v28  ;;  %501 = vmatprep.subr.mxu1 %v575_v28  ;;  %v576_v36 = vmov -inf  }
  0x10   :  { %v47_v6 = vld [vmem:[#allocation4 + $0x58] sm:$0xff]  ;;  %v53_v7 = vadd.f32 %v37_v4, %v36_v2  ;;  %v38_v8 = vld [vmem:[#allocation4 + $0x10] sm:$0xff]  ;;  %v48_v12 = vld [vmem:[#allocation4 + $0x60] sm:$0xff]  ;;  %v138_v25 = vmax.f32 %v36_v2, %v37_v4  ;;  %35 = vst.msk [vmem:[#allocation3] sm:$0x3] %vm33_vm0, %v576_v36  ;;  %vm577_vm1 = vmmov 0  }
  0x11   :  { %v39_v9 = vld [vmem:[#allocation4 + $0x18] sm:$0xff]  ;;  %66 = vadd.xlane.f32.xlu1 %v65_v3  ;;  %v68_v10 = vadd.f32 %v47_v6, %v46_v5  ;;  %v49_v13 = vld [vmem:[#allocation4 + $0x68] sm:$0xff]  ;;  %v40_v14 = vld [vmem:[#allocation4 + $0x20] sm:$0xff]  ;;  %v153_v26 = vmax.f32 %v46_v5, %v47_v6  ;;  %498 = vmatprep.mubr.msk.f32.mxu0 %vm577_vm1, %v575_v28  ;;  %v86_v39 = vand.u32 127, %v85_v38  ;;  %v88_v44 = vshrl.u32 %v85_v38, 7  ;;  %s578_s27 = smov [#allocation7]  }
  0x12   :  { %54 = vadd.xlane.f32.xlu0 %v53_v7  ;;  %v56_v11 = vadd.f32 %v39_v9, %v38_v8  ;;  %v41_v15 = vld [vmem:[#allocation4 + $0x28] sm:$0xff]  ;;  %v71_v16 = vadd.f32 %v49_v13, %v48_v12  ;;  %v50_v18 = vld [vmem:[#allocation4 + $0x70] sm:$0xff]  ;;  %v51_v19 = vld [vmem:[#allocation4 + $0x78] sm:$0xff]  ;;  %v141_v24 = vmax.f32 %v38_v8, %v39_v9  ;;  %v156_v29 = vmax.f32 %v48_v12, %v49_v13 }
  0x13   :  { %v59_v17 = vadd.f32 %v41_v15, %v40_v14  ;;  %v42_v20 = vld [vmem:[#allocation4 + $0x30] sm:$0xff]  ;;  %v43_v21 = vld [vmem:[#allocation4 + $0x38] sm:$0xff]  ;;  %v74_v22 = vadd.f32 %v51_v19, %v50_v18  ;;  %v144_v30 = vmax.f32 %v40_v14, %v41_v15  ;;  %v159_v31 = vmax.f32 %v50_v18, %v51_v19  ;;  %v216_v35 = vld [vmem:[%s658_s1 + $0x8] sm:$0xff]  ;;  %509 = vmatprep.mubr.msk.f32.mxu1 %vm577_vm1, %v575_v28 }
  0x14   :  { %v62_v23 = vadd.f32 %v43_v21, %v42_v20  ;;  %v147_v32 = vmax.f32 %v42_v20, %v43_v21  ;;  %v218_v33 = vld [vmem:[%s658_s1 + $0x18] sm:$0xff]  ;;  %v217_v34 = vld [vmem:[%s658_s1 + $0x10] sm:$0xff]  ;;  %v215_v37 = vld [vmem:[%s658_s1] sm:$0xff]  ;;  %v91_v42 = vadd.s32 4294967288, %v86_v39  ;;  %v98_v43 = vadd.s32 4294967280, %v86_v39 }
  0x15   :  { %69 = vadd.xlane.f32.xlu1 %v68_v10  ;;  %491 = vmatpush3.msra.mxu0 %v218_v33  ;;  %v105_v48 = vadd.s32 4294967272, %v86_v39  ;;  %v89_v50 = vsub.s32 %v86_v39, %v88_v44  ;;  %vm96_vm2 = vcmask 130112   ;;  %vm103_vm3 = vcmask 195712   ;;  %v219_v38 = vld [vmem:[%s659_s2] sm:$0x3]  ;;  %s464_s2 = sshll.u32 %s578_s27, 4  ;;  %s465_s2 = int_to_ptr.vmem [resolvable:$true] %s464_s2 }
  0x16   :  { %57 = vadd.xlane.f32.xlu0 %v56_v11  ;;  %502 = vmatpush3.msra.mxu1 %v218_v33  ;;  %v94_v46 = vsub.s32 %v91_v42, %v88_v44  ;;  %v101_v49 = vsub.s32 %v98_v43, %v88_v44  ;;  %vm110_vm4 = vcmask 261312   ;;  %vm131_vm5 = vcmask 1041409   ;;  %v52_v5 = vld [vmem:[#allocation2] sm:$0x3]  ;;  %s548_s28 = scalar_lea.vmem %s465_s2, 32  ;;  %p553_p6 = scmp.lt.s32.totalorder %s465_s2, %s465_s2 }
  0x17   :  { %492 = vmatprep.subr.mxu0 %v575_v28  ;;  %503 = vmatprep.subr.mxu1 %v575_v28  ;;  %v108_v54 = vsub.s32 %v105_v48, %v88_v44  ;;  %vm223_vm6 = vcmask 261120   ;;  %v137_v33 = vld [vmem:[#allocation3] sm:$0x3]  ;;  %vm377_vm7 = vcmask 1041408   ;;  %vm373_vm8 = vcmask 15360   ;;  %p549_p5 = scmp.ne.s32.totalorder %s465_s2, %s548_s28  ;;  %p554_p7 = scmp.lt.s32.totalorder %s548_s28, %s548_s28 }
  0x18   :  { %493 = vmatpush3.msra.mxu0 %v217_v34  ;;  %504 = vmatpush3.msra.mxu1 %v217_v34 }
  0x19   :  { %72 = vadd.xlane.f32.xlu1 %v71_v16  ;;  %494 = vmatprep.subr.mxu0 %v575_v28  ;;  %p555_p8 = por %p554_p7, %p553_p6 }
  0x1a   :  { %60 = vadd.xlane.f32.xlu0 %v59_v17  ;;  %505 = vmatprep.subr.mxu1 %v575_v28 }
  0x1b   :  { %495 = vmatpush3.msra.mxu0 %v216_v35  ;;  %506 = vmatpush3.msra.mxu1 %v216_v35  ;;  %p556_p9 = pnand %p555_p8, %p549_p5 }
  0x1c   :  { %496 = vmatprep.subr.mxu0 %v575_v28  ;;  %507 = vmatprep.subr.mxu1 %v575_v28 }
  0x1d   :  { %75 = vadd.xlane.f32.xlu1 %v74_v22  ;;  %497 = vmatpush3.msra.mxu0 %v215_v37 }
  0x1e   :  { %63 = vadd.xlane.f32.xlu0 %v62_v23  ;;  %508 = vmatpush3.msra.mxu1 %v215_v37 }
  0x1f   :  { %512 = vmatprep.subr.mxu0 %v575_v28 }
  0x21   :  { %142 = vmax.xlane.f32.xlu1 %v141_v24 }
  0x22   :  { %139 = vmax.xlane.f32.xlu0 %v138_v25 }
  0x25   :  { %154 = vmax.xlane.f32.xlu1 %v153_v26 }
  0x26   :  { %151 = vmax.xlane.f32.xlu0 %v150_v27 }
  0x29   :  { %157 = vmax.xlane.f32.xlu1 %v156_v29 }
  0x2a   :  { %145 = vmax.xlane.f32.xlu0 %v144_v30 }
  0x2d   :  { %160 = vmax.xlane.f32.xlu1 %v159_v31 }
  0x2e   :  { %148 = vmax.xlane.f32.xlu0 %v147_v32 }
  0x9a   :  { %v67_v40 = vpop.xlane.xlu1 %66 }
  0x9b   :  { %v55_v41 = vpop.xlane.xlu0 %54  ;;  %v115_v57 = vrot.slane %v67_v40, %v89_v50 }
  0x9c   :  { %v90_v59 = vrot.slane %v55_v41, %v89_v50 }
  0x9e   :  { %v70_v45 = vpop.xlane.xlu1 %69 }
  0x9f   :  { %v58_v47 = vpop.xlane.xlu0 %57  ;;  %v119_v52 = vrot.slane %v70_v45, %v94_v46 }
  0xa0   :  { %v95_v55 = vrot.slane %v58_v47, %v94_v46 }
  0xa1   :  { %v120_v61 = vsel %vm96_vm2, %v119_v52, %v115_v57 }
  0xa2   :  { %v73_v51 = vpop.xlane.xlu1 %72  ;;  %v97_v0 = vsel %vm96_vm2, %v95_v55, %v90_v59 }
  0xa3   :  { %v61_v53 = vpop.xlane.xlu0 %60  ;;  %v124_v56 = vrot.slane %v73_v51, %v101_v49 }
  0xa4   :  { %v102_v58 = vrot.slane %v61_v53, %v101_v49 }
  0xa5   :  { %v125_v1 = vsel %vm103_vm3, %v124_v56, %v120_v61 }
  0xa6   :  { %v76_v60 = vpop.xlane.xlu1 %75  ;;  %v104_v3 = vsel %vm103_vm3, %v102_v58, %v97_v0 }
  0xa7   :  { %v129_v62 = vrot.slane %v76_v60, %v108_v54  ;;  %v64_v63 = vpop.xlane.xlu0 %63 }
  0xa8   :  { %v109_v2 = vrot.slane %v64_v63, %v108_v54 }
  0xa9   :  { %v130_v4 = vsel %vm110_vm4, %v129_v62, %v125_v1 }
  0xaa   :  { %v111_v6 = vsel %vm110_vm4, %v109_v2, %v104_v3  ;;  %v143_v7 = vpop.xlane.xlu1 %142 }
  0xab   :  { %v132_v8 = vsel %vm131_vm5, %v130_v4, %v111_v6  ;;  %v140_v9 = vpop.xlane.xlu0 %139  ;;  %v177_v17 = vrot.slane %v143_v7, %v94_v46 }
  0xac   :  { %v134_v10 = vadd.f32 %v132_v8, %v52_v5  ;;  %v173_v18 = vrot.slane %v140_v9, %v89_v50 }
  0xae   :  { %136 = vst.msk [vmem:[#allocation2] sm:$0x3] %vm33_vm0, %v134_v10  ;;  %v155_v11 = vpop.xlane.xlu1 %154  ;;  %v178_v27 = vsel %vm96_vm2, %v177_v17, %v173_v18 }
  0xaf   :  { %v152_v12 = vpop.xlane.xlu0 %151  ;;  %v196_v14 = vrot.slane %v155_v11, %v94_v46 }
  0xb0   :  { %v192_v15 = vrot.slane %v152_v12, %v89_v50 }
  0xb2   :  { %v158_v13 = vpop.xlane.xlu1 %157  ;;  %v197_v24 = vsel %vm96_vm2, %v196_v14, %v192_v15 }
  0xb3   :  { %v146_v16 = vpop.xlane.xlu0 %145  ;;  %v201_v19 = vrot.slane %v158_v13, %v101_v49 }
  0xb4   :  { %v182_v20 = vrot.slane %v146_v16, %v101_v49 }
  0xb5   :  { %v220_v21 = vld [vmem:[#allocation2] sm:$0x3]  ;;  %v202_v29 = vsel %vm103_vm3, %v201_v19, %v197_v24 }
  0xb6   :  { %v161_v22 = vpop.xlane.xlu1 %160  ;;  %v221_v23 = vmul.f32 0.00390625, %v220_v21  ;;  %v183_v31 = vsel %vm103_vm3, %v182_v20, %v178_v27 }
  0xb7   :  { %v206_v25 = vrot.slane %v161_v22, %v108_v54  ;;  %v149_v26 = vpop.xlane.xlu0 %148 }
  0xb8   :  { %v187_v30 = vrot.slane %v149_v26, %v108_v54  ;;  %499 = vmatmul.mubr.msk.f32.vlgmr.msra.gmra.mxu0 %vm223_vm6, %v221_v23 }
  0xb9   :  { %v207_v32 = vsel %vm110_vm4, %v206_v25, %v202_v29  ;;  %514 = vmatprep.mubr.msk.f32.mxu0 %vm577_vm1, %v575_v28  ;;  %513 = vmatpush3.msk.msra.mxu0 %vm377_vm7, %v219_v38 }
  0xba   :  { %v188_v34 = vsel %vm110_vm4, %v187_v30, %v183_v31 }
  0xbb   :  { %v208_v35 = vsel %vm131_vm5, %v207_v32, %v188_v34 }
  0xbc   :  { %v210_v36 = vmax.f32 %v137_v33, %v208_v35 }
  0xbe   :  { %211 = vst.msk [vmem:[#allocation3] sm:$0x3] %vm33_vm0, %v210_v36 }
  0xc5   :  { %v222_v37 = vld [vmem:[#allocation3] sm:$0x3] }
  0xc6   :  { %510 = vmatmul.mubr.msk.f32.vlgmr.msra.gmra.mxu1 %vm223_vm6, %v222_v37 }
 0x178   :  { %v293_v39 = vpop.f32.mrf.mxu0 }
 0x179   :  { %v297_v28 = vmax.f32 %v293_v39, 0.0 }
 0x17a   :  { %v500_v40 = vpop.f32.mrf.mxu0 }
 0x186   :  { %v367_v41 = vpop.f32.mrf.mxu1 }
 0x187   :  { %v371_v42 = vmax.f32 %v367_v41, 0.0 }
 0x188   :  { %v511_v43 = vpop.f32.mrf.mxu1 }
 0x189   :  { %v372_v44 = vadd.f32 %v371_v42, %v297_v28 }
 0x18b   :  { %515 = vmatmul.mubr.msk.f32.vlgmr.msra.gmra.mxu0 %vm373_vm8, %v372_v44 }
 0x24b   :  { %v447_v45 = vpop.f32.mrf.mxu0 }
 0x24c   :  { %v477_v46 = vmul.f32 -1.442695, %v447_v45 }
 0x24d   :  { %v516_v47 = vpop.f32.mrf.mxu0 }
 0x24e   :  { %524 = vpow2.f32 %v477_v46 }
 0x25b   :  { %v525_v48 = vpop.eup %524 }
 0x25c   :  { %v454_v49 = vadd.f32 1.0, %v525_v48 }
 0x25e   :  { %526 = vrcp.f32 %v454_v49 }
 0x26b   :  { %v527_v50 = vpop.eup %526 }
 0x26c   :  { %457 = vst.msk [vmem:[#allocation7] sm:$0x3] %vm33_vm0, %v527_v50 }
 0x26d   :  { %559 = shalt.err (!%p556_p9)
}
 0x26e   :  { %467 = dma.vmem_to_hbm [thread:$0]  %s465_s2, 32, %s660_s3, [#allocation6]  }
 0x26f   :  { %570 = dma.done.wait [#allocation6], 32  }
 0x270   :  { %571 = vsyncadd [#allocation6], 4294967264 }
 0x271   :  { %471 = vsyncpa [#allocation5], 1 }
 0x272   :  { %472 = vsyncpa [#allocation6], 1 }

</bundles_post_ra>
